<compile_context>
chip_gen: v6e
topology: v6e:2x2x1
jax: 0.10.0
libtpu: 0.0.40
codegen_flags: <defaults>
</compile_context>

<pallas_src>
import functools
from typing import NamedTuple

import jax
import jax.numpy as jnp
from jax.experimental import pallas as pl
from jax.experimental.pallas import tpu as pltpu


def _round_up(n, m):
    return ((n + m - 1) // m) * m


def _pad2d(a, shape):
    out = jnp.zeros(shape, a.dtype)
    return out.at[: a.shape[0], : a.shape[1]].set(a)


class VAEDims(NamedTuple):
    F: int      # image_size (encoder input / decoder output)
    H: int      # hidden_dims (encoder)
    L: int      # latent_dims
    FP: int     # padded image_size
    HP: int     # padded encoder hidden
    Lh: int     # padded width of mu (== width of logvar) inside the fused head
    headW: int  # fused mu|logvar head width == 2 * Lh
    HDP: int    # padded decoder hidden
    OP: int     # padded output width


# ----------------------------------------------------------------------------
# Kernel
# ----------------------------------------------------------------------------
def vae_kernel(x_ref, w1_ref, b1_ref, w23_ref, b23_ref, eps_ref,
               w4_ref, b4_ref, w5_ref, b5_ref,
               y_ref, klp_ref, *, latent_size, lh):
    f32 = jnp.float32

    # ---- Encoder -----------------------------------------------------------
    h = jnp.tanh(
        jnp.dot(x_ref[...], w1_ref[...], preferred_element_type=f32) + b1_ref[...])

    # Fused (and, for small latents, lane-packed) mu|logvar head:
    # one [tb, HP] @ [HP, 2*Lh] matmul, then static lane slices.
    hw = (jnp.dot(h.astype(w23_ref.dtype), w23_ref[...], preferred_element_type=f32)
          + b23_ref[...])
    mu = hw[:, :lh]
    logvar = hw[:, lh:2 * lh]
    var = jnp.exp(logvar)
    z = mu + var * eps_ref[...].astype(f32)          # reparameterized latent sample

    # Per-tile KL partial, masked to the real (unpadded) latent lanes.
    # Fold sublane groups with VPU adds only; the single cross-lane reduce over
    # all partials happens once in the wrapper (no per-step XLU reduce, no
    # loop-carried scalar accumulator -> batch axis can be "parallel").
    lane = jax.lax.broadcasted_iota(jnp.int32, mu.shape, dimension=1)
    kl_mat = jnp.where(lane < latent_size, var * var + mu * mu - logvar - 0.5, 0.0)
    tb = kl_mat.shape[0]
    klp_ref[...] = kl_mat.reshape(tb // 8, 8, lh).sum(axis=0)[None]

    # ---- Decoder -----------------------------------------------------------
    d = jnp.maximum(
        jnp.dot(z.astype(w4_ref.dtype), w4_ref[...], preferred_element_type=f32)
        + b4_ref[...], 0.0)
    y_ref[...] = (
        jnp.dot(d.astype(w5_ref.dtype), w5_ref[...], preferred_element_type=f32)
        + b5_ref[...]).astype(y_ref.dtype)


# ----------------------------------------------------------------------------
# One-time parameter / input preparation (hoisted out of the hot path)
# ----------------------------------------------------------------------------
def prepare_vae_params(params, *, matmul_dtype=jnp.bfloat16):
    """Pad, cast and head-fuse the module parameters once (hoisted from forward)."""
    w1, b1, w2, b2, w3, b3, w4, b4, w5, b5 = params
    F, H = w1.shape
    L = w2.shape[1]
    HD = w4.shape[1]
    O = w5.shape[1]

    FP = _round_up(F, 128)
    HP = _round_up(H, 128)
    HDP = _round_up(HD, 128)
    OP = _round_up(O, 128)
    # Pack mu|logvar into one 128-lane tile when both halves fit in 64 lanes.
    Lh = 64 if 2 * L <= 128 else _round_up(L, 128)
    headW = 2 * Lh

    dims = VAEDims(F=F, H=H, L=L, FP=FP, HP=HP, Lh=Lh, headW=headW, HDP=HDP, OP=OP)

    w1_p = _pad2d(w1, (FP, HP)).astype(matmul_dtype)
    b1_p = _pad2d(b1, (1, HP)).astype(jnp.float32)
    w23_p = jnp.concatenate(
        [_pad2d(w2, (HP, Lh)), _pad2d(w3, (HP, Lh))], axis=1).astype(matmul_dtype)
    b23_p = jnp.concatenate(
        [_pad2d(b2, (1, Lh)), _pad2d(b3, (1, Lh))], axis=1).astype(jnp.float32)
    w4_p = _pad2d(w4, (Lh, HDP)).astype(matmul_dtype)
    b4_p = _pad2d(b4, (1, HDP)).astype(jnp.float32)
    w5_p = _pad2d(w5, (HDP, OP)).astype(matmul_dtype)
    b5_p = _pad2d(b5, (1, OP)).astype(jnp.float32)

    return (w1_p, b1_p, w23_p, b23_p, w4_p, b4_p, w5_p, b5_p), dims


def prepare_inputs(x, eps, dims, *, matmul_dtype=jnp.bfloat16, eps_dtype=jnp.bfloat16):
    """Pad/cast activations; no-op if they are already prepared."""
    B = x.shape[0]
    if x.shape[1] == dims.FP and x.dtype == matmul_dtype:
        x_p = x
    else:
        x_p = _pad2d(x, (B, dims.FP)).astype(matmul_dtype)
    if eps.shape[1] == dims.Lh and eps.dtype == eps_dtype:
        eps_p = eps
    else:
        eps_p = _pad2d(eps, (B, dims.Lh)).astype(eps_dtype)
    return x_p, eps_p


# ----------------------------------------------------------------------------
# VMEM budgeting & batch-tile selection
# ----------------------------------------------------------------------------
def _vmem_estimate(tb, d, *, mm_itemsize=2, out_itemsize=2):
    # Resident weights/biases and streamed blocks are double-buffered by default.
    w = (d.FP * d.HP + d.HP * d.headW + d.Lh * d.HDP + d.HDP * d.OP) * mm_itemsize
    b = (d.HP + d.headW + d.HDP + d.OP) * 4
    stream = tb * (d.FP * mm_itemsize + d.Lh * mm_itemsize + d.OP * out_itemsize) \
        + 8 * d.Lh * 4
    interm = tb * (d.HP + d.headW + 4 * d.Lh + d.HDP) * 4   # live f32 intermediates
    return 2 * (w + b + stream) + interm


def _choose_tb(B, d, budget_bytes, out_itemsize):
    for tb in (2048, 1024, 512, 256, 128, 64, 32, 16, 8):
        if tb <= B and B % tb == 0 and \
                _vmem_estimate(tb, d, out_itemsize=out_itemsize) <= budget_bytes:
            return tb
    return B


# ----------------------------------------------------------------------------
# Forward wrapper
# ----------------------------------------------------------------------------
def vae_forward(x, eps, padded_params, dims, *, tb=None,
                out_dtype=jnp.bfloat16, matmul_dtype=jnp.bfloat16,
                eps_dtype=jnp.bfloat16, vmem_budget_bytes=24 << 20,
                unpad_output=False):
    """Full VAE forward (encoder + reparameterization + decoder), batch-tiled.

    Returns (reconstruction, kl).  By default the reconstruction is the padded
    [B, OP] slab in `out_dtype` (columns >= image_size are exact zeros); pass
    unpad_output=True to slice to [B, image_size] (costs one extra XLA copy).
    """
    w1_p, b1_p, w23_p, b23_p, w4_p, b4_p, w5_p, b5_p = padded_params
    d = dims
    B = x.shape[0]

    x_p, eps_p = prepare_inputs(x, eps, d, matmul_dtype=matmul_dtype,
                                eps_dtype=eps_dtype)

    out_itemsize = jnp.dtype(out_dtype).itemsize
    if tb is None:
        tb = _choose_tb(B, d, vmem_budget_bytes, out_itemsize)
    assert B % tb == 0, "batch must be divisible by the batch tile"
    assert tb % 8 == 0, "batch tile must be a multiple of 8"
    grid = B // tb

    vmem_limit = min(
        int(_vmem_estimate(tb, d, out_itemsize=out_itemsize) * 1.5) + (4 << 20),
        96 << 20)

    resident = lambda shape: pl.BlockSpec(shape, lambda i: (0,) * len(shape))
    kernel = functools.partial(vae_kernel, latent_size=d.L, lh=d.Lh)

    y_p, kl_parts = pl.pallas_call(
        kernel,
        out_shape=(
            jax.ShapeDtypeStruct((B, d.OP), out_dtype),
            jax.ShapeDtypeStruct((grid, 8, d.Lh), jnp.float32),
        ),
        grid_spec=pltpu.PrefetchScalarGridSpec(
            num_scalar_prefetch=0,
            grid=(grid,),
            in_specs=[
                pl.BlockSpec((tb, d.FP), lambda i: (i, 0)),    # x tile (streams)
                resident((d.FP, d.HP)),                        # w1
                resident((1, d.HP)),                           # b1
                resident((d.HP, d.headW)),                     # w23 (fused heads)
                resident((1, d.headW)),                        # b23
                pl.BlockSpec((tb, d.Lh), lambda i: (i, 0)),    # eps tile (streams, bf16)
                resident((d.Lh, d.HDP)),                       # w4
                resident((1, d.HDP)),                          # b4
                resident((d.HDP, d.OP)),                       # w5
                resident((1, d.OP)),                           # b5
            ],
            out_specs=[
                pl.BlockSpec((tb, d.OP), lambda i: (i, 0)),       # reconstruction
                pl.BlockSpec((1, 8, d.Lh), lambda i: (i, 0, 0)),  # per-tile KL partial
            ],
        ),
        # No loop-carried state -> batch axis is embarrassingly parallel
        # (v7x megacore uses both TensorCores; no-op on v5e/v6e).
        compiler_params=pltpu.CompilerParams(
            dimension_semantics=("parallel",),
            vmem_limit_bytes=vmem_limit),
    )(x_p, w1_p, b1_p, w23_p, b23_p, eps_p, w4_p, b4_p, w5_p, b5_p)

    kl = jnp.sum(kl_parts)
    if unpad_output:
        return y_p[:, :d.F], kl
    return y_p, kl


# ----------------------------------------------------------------------------
# Params / reference
# ----------------------------------------------------------------------------
def init_params(key, image_size, hidden_size, latent_size):
    """Deterministic synthetic init; weights stored as [in, out] (nn.Linear^T)."""
    keys = jax.random.split(key, 10)

    def lin(kw, kb, fan_in, fan_out):
        s = 1.0 / jnp.sqrt(float(fan_in))
        w = jax.random.uniform(kw, (fan_in, fan_out), jnp.float32, -s, s)
        b = jax.random.uniform(kb, (1, fan_out), jnp.float32, -s, s)
        return w, b

    w1, b1 = lin(keys[0], keys[1], image_size, hidden_size)    # encoder l1
    w2, b2 = lin(keys[2], keys[3], hidden_size, latent_size)   # encoder l2 (mu)
    w3, b3 = lin(keys[4], keys[5], hidden_size, latent_size)   # encoder l3 (logvar)
    w4, b4 = lin(keys[6], keys[7], latent_size, hidden_size)   # decoder l1
    w5, b5 = lin(keys[8], keys[9], hidden_size, image_size)    # decoder l2
    return (w1, b1, w2, b2, w3, b3, w4, b4, w5, b5)


def reference_forward(x, params, eps, matmul_dtype=jnp.float32, eps_dtype=None):
    """Pure-JAX reference mirroring the PyTorch VariationalAutoEncoder forward."""
    w1, b1, w2, b2, w3, b3, w4, b4, w5, b5 = params
    if eps_dtype is not None:
        eps = eps.astype(eps_dtype).astype(jnp.float32)
    mm = lambda a, b: jnp.dot(a.astype(matmul_dtype), b.astype(matmul_dtype),
                              preferred_element_type=jnp.float32)
    h = jnp.tanh(mm(x, w1) + b1)
    mu = mm(h, w2) + b2
    logvar = mm(h, w3) + b3
    var = jnp.exp(logvar)
    z = mu + var * eps
    kl = jnp.sum(var ** 2 + mu ** 2 - logvar - 0.5)   # torch.log(var) == logvar
    d = jnp.maximum(mm(z, w4) + b4, 0.0)
    y = mm(d, w5) + b5
    return y, kl


# ----------------------------------------------------------------------------
# Demo / self-test
# ----------------------------------------------------------------------------
if __name__ == "__main__":
    def run_case(B, F, H, L, tb, key):
        k_x, k_p, k_eps = jax.random.split(key, 3)
        x = jax.random.normal(k_x, (B, F), dtype=jnp.float32)
        params = init_params(k_p, F, H, L)
        eps = jax.random.normal(k_eps, (B, L), dtype=jnp.float32)

        padded_params, dims = prepare_vae_params(params)   # one-time (hoisted)
        x_p, eps_p = prepare_inputs(x, eps, dims)           # per-batch (hoisted)

        y_pad, kl = vae_forward(x_p, eps_p, padded_params, dims, tb=tb)
        jax.block_until_ready((y_pad, kl))
        assert y_pad.shape == (B, dims.OP)
        y = y_pad[:, :F].astype(jnp.float32)
        assert y.shape == (B, F)

        # Tight check vs a reference emulating the kernel's bf16 matmul inputs,
        # bf16 eps stream, and bf16 output store.
        y_bf, kl_bf = reference_forward(x, params, eps,
                                        matmul_dtype=jnp.bfloat16,
                                        eps_dtype=jnp.bfloat16)
        y_bf16 = y_bf.astype(jnp.bfloat16).astype(jnp.float32)
        assert jnp.allclose(y, y_bf16, atol=2e-2, rtol=2e-2), \
            float(jnp.max(jnp.abs(y - y_bf16)))
        assert jnp.allclose(kl, kl_bf, atol=5e-2, rtol=1e-3), \
            (float(kl), float(kl_bf))

        # Loose sanity check vs exact-f32 module semantics (bf16 rounding only).
        y_ref, kl_ref = reference_forward(x, params, eps)
        assert jnp.allclose(y, y_ref, atol=1e-1, rtol=1e-1), \
            float(jnp.max(jnp.abs(y - y_ref)))
        assert jnp.allclose(kl, kl_ref, atol=1.0, rtol=2e-2), \
            (float(kl), float(kl_ref))

    key = jax.random.PRNGKey(0)
    k1, k2 = jax.random.split(key)

    # Case A: MNIST-like small shapes, packed mu|logvar head (2*L <= 128),
    # tb=16 -> 2 grid steps: exercises the batch pipeline, per-tile KL partials
    # and the "parallel" batch axis.
    run_case(B=32, F=64, H=32, L=16, tb=16, key=k1)

    # Case B: wide latent (2*L > 128) -> tile-aligned (unpacked) head path,
    # tb=None exercises the automatic batch-tile / VMEM-budget chooser.
    run_case(B=16, F=100, H=48, L=80, tb=None, key=k2)

    print("KERNEL_OK")
</pallas_src>

<mosaic_0001>
module attributes {stable_mosaic.version = 11 : i64} {
  func.func @vae_kernel(%arg0: i32, %arg1: memref<16x128xbf16, #tpu.memory_space<vmem>>, %arg2: memref<128x128xbf16, #tpu.memory_space<vmem>>, %arg3: memref<1x128xf32, #tpu.memory_space<vmem>>, %arg4: memref<128x128xbf16, #tpu.memory_space<vmem>>, %arg5: memref<1x128xf32, #tpu.memory_space<vmem>>, %arg6: memref<16x64xbf16, #tpu.memory_space<vmem>>, %arg7: memref<64x128xbf16, #tpu.memory_space<vmem>>, %arg8: memref<1x128xf32, #tpu.memory_space<vmem>>, %arg9: memref<128x128xbf16, #tpu.memory_space<vmem>>, %arg10: memref<1x128xf32, #tpu.memory_space<vmem>>, %arg11: memref<16x128xbf16, #tpu.memory_space<vmem>>, %arg12: memref<1x8x64xf32, #tpu.memory_space<vmem>>) attributes {dimension_semantics = [#tpu.dimension_semantics<parallel>], iteration_bounds = array<i64: 2>, scalar_prefetch = 0 : i64, scratch_operands = 0 : i64, tpu.core_type = #tpu.core_type<tc>, window_params = [{transform_indices = @transform_0, window_bounds = array<i64: 16, 128>}, {pipeline_mode = #tpu.pipeline_mode<synchronous>, transform_indices = @transform_1, window_bounds = array<i64: 128, 128>}, {pipeline_mode = #tpu.pipeline_mode<synchronous>, transform_indices = @transform_2, window_bounds = array<i64: 1, 128>}, {pipeline_mode = #tpu.pipeline_mode<synchronous>, transform_indices = @transform_3, window_bounds = array<i64: 128, 128>}, {pipeline_mode = #tpu.pipeline_mode<synchronous>, transform_indices = @transform_4, window_bounds = array<i64: 1, 128>}, {transform_indices = @transform_5, window_bounds = array<i64: 16, 64>}, {pipeline_mode = #tpu.pipeline_mode<synchronous>, transform_indices = @transform_6, window_bounds = array<i64: 64, 128>}, {pipeline_mode = #tpu.pipeline_mode<synchronous>, transform_indices = @transform_7, window_bounds = array<i64: 1, 128>}, {pipeline_mode = #tpu.pipeline_mode<synchronous>, transform_indices = @transform_8, window_bounds = array<i64: 128, 128>}, {pipeline_mode = #tpu.pipeline_mode<synchronous>, transform_indices = @transform_9, window_bounds = array<i64: 1, 128>}, {transform_indices = @transform_10, window_bounds = array<i64: 16, 128>}, {transform_indices = @transform_11, window_bounds = array<i64: 1, 8, 64>}]} {
    %c0 = arith.constant 0 : index
    %c0_0 = arith.constant 0 : index
    %0 = vector.load %arg1[%c0, %c0_0] : memref<16x128xbf16, #tpu.memory_space<vmem>>, vector<16x128xbf16>
    %c0_1 = arith.constant 0 : index
    %c0_2 = arith.constant 0 : index
    %1 = vector.load %arg2[%c0_1, %c0_2] : memref<128x128xbf16, #tpu.memory_space<vmem>>, vector<128x128xbf16>
    %cst = arith.constant dense<0.000000e+00> : vector<16x128xf32>
    %2 = tpu.matmul %0, %1, %cst {dimension_numbers = #tpu.dot_dimension_numbers<[1], [0], [0], [1], [0, 0, 1, 1], [], []>} : vector<16x128xbf16>, vector<128x128xbf16>, vector<16x128xf32> -> vector<16x128xf32>
    %c0_3 = arith.constant 0 : index
    %c0_4 = arith.constant 0 : index
    %3 = vector.load %arg3[%c0_3, %c0_4] : memref<1x128xf32, #tpu.memory_space<vmem>>, vector<1x128xf32>
    %4 = vector.broadcast %3 : vector<1x128xf32> to vector<16x128xf32>
    %5 = arith.addf %2, %4 : vector<16x128xf32>
    %6 = math.tanh %5 : vector<16x128xf32>
    %7 = arith.truncf %6 : vector<16x128xf32> to vector<16x128xbf16>
    %c0_5 = arith.constant 0 : index
    %c0_6 = arith.constant 0 : index
    %8 = vector.load %arg4[%c0_5, %c0_6] : memref<128x128xbf16, #tpu.memory_space<vmem>>, vector<128x128xbf16>
    %cst_7 = arith.constant dense<0.000000e+00> : vector<16x128xf32>
    %9 = tpu.matmul %7, %8, %cst_7 {dimension_numbers = #tpu.dot_dimension_numbers<[1], [0], [0], [1], [0, 0, 1, 1], [], []>} : vector<16x128xbf16>, vector<128x128xbf16>, vector<16x128xf32> -> vector<16x128xf32>
    %c0_8 = arith.constant 0 : index
    %c0_9 = arith.constant 0 : index
    %10 = vector.load %arg5[%c0_8, %c0_9] : memref<1x128xf32, #tpu.memory_space<vmem>>, vector<1x128xf32>
    %11 = vector.broadcast %10 : vector<1x128xf32> to vector<16x128xf32>
    %12 = arith.addf %9, %11 : vector<16x128xf32>
    %13 = vector.extract_strided_slice %12 {offsets = [0, 0], sizes = [16, 64], strides = [1, 1]} : vector<16x128xf32> to vector<16x64xf32>
    %14 = vector.extract_strided_slice %12 {offsets = [0, 64], sizes = [16, 64], strides = [1, 1]} : vector<16x128xf32> to vector<16x64xf32>
    %15 = math.exp %14 : vector<16x64xf32>
    %c0_10 = arith.constant 0 : index
    %c0_11 = arith.constant 0 : index
    %16 = vector.load %arg6[%c0_10, %c0_11] : memref<16x64xbf16, #tpu.memory_space<vmem>>, vector<16x64xbf16>
    %17 = arith.extf %16 : vector<16x64xbf16> to vector<16x64xf32>
    %18 = arith.mulf %15, %17 : vector<16x64xf32>
    %19 = arith.addf %13, %18 : vector<16x64xf32>
    %20 = tpu.iota {dimensions = array<i32: 1>} : vector<16x64xi32>
    %c16_i32 = arith.constant 16 : i32
    %21 = vector.broadcast %c16_i32 : i32 to vector<16x64xi32>
    %22 = arith.cmpi slt, %20, %21 : vector<16x64xi32>
    %23 = arith.mulf %15, %15 : vector<16x64xf32>
    %24 = arith.mulf %13, %13 : vector<16x64xf32>
    %25 = arith.addf %23, %24 : vector<16x64xf32>
    %26 = arith.subf %25, %14 : vector<16x64xf32>
    %cst_12 = arith.constant 5.000000e-01 : f32
    %27 = vector.broadcast %cst_12 : f32 to vector<16x64xf32>
    %28 = arith.subf %26, %27 : vector<16x64xf32>
    %cst_13 = arith.constant 0.000000e+00 : f32
    %29 = vector.broadcast %cst_13 : f32 to vector<16x64xf32>
    %30 = arith.select %22, %28, %29 : vector<16x64xi1>, vector<16x64xf32>
    %31 = vector.shape_cast %30 : vector<16x64xf32> to vector<2x8x64xf32>
    %cst_14 = arith.constant dense<0.000000e+00> : vector<8x64xf32>
    %32 = vector.multi_reduction <add>, %31, %cst_14 [0] : vector<2x8x64xf32> to vector<8x64xf32>
    %33 = vector.shape_cast %32 : vector<8x64xf32> to vector<1x8x64xf32>
    %c0_15 = arith.constant 0 : index
    %c0_16 = arith.constant 0 : index
    %c0_17 = arith.constant 0 : index
    %34 = vector.load %arg12[%c0_15, %c0_16, %c0_17] : memref<1x8x64xf32, #tpu.memory_space<vmem>>, vector<1x8x64xf32>
    tpu.vector_store %arg12[%c0_15, %c0_16, %c0_17], %33 {strides = array<i32>} : memref<1x8x64xf32, #tpu.memory_space<vmem>>, vector<1x8x64xf32>,
    %35 = arith.truncf %19 : vector<16x64xf32> to vector<16x64xbf16>
    %c0_18 = arith.constant 0 : index
    %c0_19 = arith.constant 0 : index
    %36 = vector.load %arg7[%c0_18, %c0_19] : memref<64x128xbf16, #tpu.memory_space<vmem>>, vector<64x128xbf16>
    %cst_20 = arith.constant dense<0.000000e+00> : vector<16x128xf32>
    %37 = tpu.matmul %35, %36, %cst_20 {dimension_numbers = #tpu.dot_dimension_numbers<[1], [0], [0], [1], [0, 0, 1, 1], [], []>} : vector<16x64xbf16>, vector<64x128xbf16>, vector<16x128xf32> -> vector<16x128xf32>
    %c0_21 = arith.constant 0 : index
    %c0_22 = arith.constant 0 : index
    %38 = vector.load %arg8[%c0_21, %c0_22] : memref<1x128xf32, #tpu.memory_space<vmem>>, vector<1x128xf32>
    %39 = vector.broadcast %38 : vector<1x128xf32> to vector<16x128xf32>
    %40 = arith.addf %37, %39 : vector<16x128xf32>
    %cst_23 = arith.constant 0.000000e+00 : f32
    %41 = vector.broadcast %cst_23 : f32 to vector<16x128xf32>
    %42 = arith.maximumf %40, %41 : vector<16x128xf32>
    %43 = arith.truncf %42 : vector<16x128xf32> to vector<16x128xbf16>
    %c0_24 = arith.constant 0 : index
    %c0_25 = arith.constant 0 : index
    %44 = vector.load %arg9[%c0_24, %c0_25] : memref<128x128xbf16, #tpu.memory_space<vmem>>, vector<128x128xbf16>
    %cst_26 = arith.constant dense<0.000000e+00> : vector<16x128xf32>
    %45 = tpu.matmul %43, %44, %cst_26 {dimension_numbers = #tpu.dot_dimension_numbers<[1], [0], [0], [1], [0, 0, 1, 1], [], []>} : vector<16x128xbf16>, vector<128x128xbf16>, vector<16x128xf32> -> vector<16x128xf32>
    %c0_27 = arith.constant 0 : index
    %c0_28 = arith.constant 0 : index
    %46 = vector.load %arg10[%c0_27, %c0_28] : memref<1x128xf32, #tpu.memory_space<vmem>>, vector<1x128xf32>
    %47 = vector.broadcast %46 : vector<1x128xf32> to vector<16x128xf32>
    %48 = arith.addf %45, %47 : vector<16x128xf32>
    %49 = arith.truncf %48 : vector<16x128xf32> to vector<16x128xbf16>
    %c0_29 = arith.constant 0 : index
    %c0_30 = arith.constant 0 : index
    %50 = vector.load %arg11[%c0_29, %c0_30] : memref<16x128xbf16, #tpu.memory_space<vmem>>, vector<16x128xbf16>
    tpu.vector_store %arg11[%c0_29, %c0_30], %49 {strides = array<i32>} : memref<16x128xbf16, #tpu.memory_space<vmem>>, vector<16x128xbf16>,
    return
  }
  func.func @transform_0(%arg0: i32) -> (i32, i32) {
    %c0_i32 = arith.constant 0 : i32
    %c0_i32_0 = arith.constant 0 : i32
    return %arg0, %c0_i32 : i32, i32
  }
  func.func @transform_1(%arg0: i32) -> (i32, i32) {
    %c0_i32 = arith.constant 0 : i32
    %c0_i32_0 = arith.constant 0 : i32
    %c0_i32_1 = arith.constant 0 : i32
    return %c0_i32, %c0_i32_0 : i32, i32
  }
  func.func @transform_2(%arg0: i32) -> (i32, i32) {
    %c0_i32 = arith.constant 0 : i32
    %c0_i32_0 = arith.constant 0 : i32
    %c0_i32_1 = arith.constant 0 : i32
    return %c0_i32, %c0_i32_0 : i32, i32
  }
  func.func @transform_3(%arg0: i32) -> (i32, i32) {
    %c0_i32 = arith.constant 0 : i32
    %c0_i32_0 = arith.constant 0 : i32
    %c0_i32_1 = arith.constant 0 : i32
    return %c0_i32, %c0_i32_0 : i32, i32
  }
  func.func @transform_4(%arg0: i32) -> (i32, i32) {
    %c0_i32 = arith.constant 0 : i32
    %c0_i32_0 = arith.constant 0 : i32
    %c0_i32_1 = arith.constant 0 : i32
    return %c0_i32, %c0_i32_0 : i32, i32
  }
  func.func @transform_5(%arg0: i32) -> (i32, i32) {
    %c0_i32 = arith.constant 0 : i32
    %c0_i32_0 = arith.constant 0 : i32
    return %arg0, %c0_i32 : i32, i32
  }
  func.func @transform_6(%arg0: i32) -> (i32, i32) {
    %c0_i32 = arith.constant 0 : i32
    %c0_i32_0 = arith.constant 0 : i32
    %c0_i32_1 = arith.constant 0 : i32
    return %c0_i32, %c0_i32_0 : i32, i32
  }
  func.func @transform_7(%arg0: i32) -> (i32, i32) {
    %c0_i32 = arith.constant 0 : i32
    %c0_i32_0 = arith.constant 0 : i32
    %c0_i32_1 = arith.constant 0 : i32
    return %c0_i32, %c0_i32_0 : i32, i32
  }
  func.func @transform_8(%arg0: i32) -> (i32, i32) {
    %c0_i32 = arith.constant 0 : i32
    %c0_i32_0 = arith.constant 0 : i32
    %c0_i32_1 = arith.constant 0 : i32
    return %c0_i32, %c0_i32_0 : i32, i32
  }
  func.func @transform_9(%arg0: i32) -> (i32, i32) {
    %c0_i32 = arith.constant 0 : i32
    %c0_i32_0 = arith.constant 0 : i32
    %c0_i32_1 = arith.constant 0 : i32
    return %c0_i32, %c0_i32_0 : i32, i32
  }
  func.func @transform_10(%arg0: i32) -> (i32, i32) {
    %c0_i32 = arith.constant 0 : i32
    %c0_i32_0 = arith.constant 0 : i32
    return %arg0, %c0_i32 : i32, i32
  }
  func.func @transform_11(%arg0: i32) -> (i32, i32, i32) {
    %c0_i32 = arith.constant 0 : i32
    %c0_i32_0 = arith.constant 0 : i32
    %c0_i32_1 = arith.constant 0 : i32
    return %arg0, %c0_i32, %c0_i32_0 : i32, i32, i32
  }
}

</mosaic_0001>

<bundles_post_ra>
// kernel: tpu_custom_call.1
= control target key start
LH: loop header
LB: loop body
LE: loop exit
PB: predicated region body
PF: predicated region fallthrough
CT: control target
= control target key end

     0   :  { %s2265_s0 = inlined_call_operand.hbm [shape: bf16[32,128], index: 0, kind: input, shape index: {}]   ;;  %s2266_s1 = inlined_call_operand.hbm [shape: bf16[128,128], index: 1, kind: input, shape index: {}]   ;;  %s2267_s2 = inlined_call_operand.vmem [shape: f32[1,128], index: 2, kind: input, shape index: {}]   ;;  %s2268_s3 = inlined_call_operand.hbm [shape: bf16[128,128], index: 3, kind: input, shape index: {}]   ;;  %s2269_s4 = inlined_call_operand.vmem [shape: f32[1,128], index: 4, kind: input, shape index: {}]   ;;  %s2270_s5 = inlined_call_operand.hbm [shape: bf16[32,64], index: 5, kind: input, shape index: {}]   ;;  %s2271_s6 = inlined_call_operand.hbm [shape: bf16[64,128], index: 6, kind: input, shape index: {}]   ;;  %s2272_s7 = inlined_call_operand.vmem [shape: f32[1,128], index: 7, kind: input, shape index: {}]   ;;  %s2273_s8 = inlined_call_operand.hbm [shape: bf16[128,128], index: 8, kind: input, shape index: {}]   ;;  %s2274_s9 = inlined_call_operand.vmem [shape: f32[1,128], index: 9, kind: input, shape index: {}]   ;;  %s2275_s10 = inlined_call_operand.hbm [shape: bf16[32,128], index: 10, kind: output, shape index: {0}]   ;;  %s2276_s11 = inlined_call_operand.hbm [shape: f32[2,8,64], index: 11, kind: output, shape index: {1}]  }
   0x1   :  { %2287 = sst [smem:[#allocation26_spill]] %s2265_s0 }
   0x2   :  { %2288 = sst [smem:[#allocation27_spill]] %s2266_s1 }
   0x3   :  { %2289 = sst [smem:[#allocation28_spill]] %s2268_s3 }
   0x4   :  { %2290 = sst [smem:[#allocation29_spill]] %s2271_s6 }
   0x5   :  { %2291 = sst [smem:[#allocation30_spill]] %s2273_s8 }
   0x6   :  { %17 = vsyncpa [#allocation3], 0 }
   0x7   :  { %19 = vsyncpa [#allocation3 + $0x1], 0 }
   0x8   :  { %20 = vsyncpa [#allocation6], 0 }
   0x9   :  { %21 = vsyncpa [#allocation9], 0 }
   0xa   :  { %23 = vsyncpa [#allocation9 + $0x1], 0 }
   0xb   :  { %24 = vsyncpa [#allocation12], 0 }
   0xc   :  { %25 = vsyncpa [#allocation4], 0 }
   0xd   :  { %27 = vsyncpa [#allocation4 + $0x1], 0 }
   0xe   :  { %28 = vsyncpa [#allocation15], 0 }
   0xf   :  { %30 = vsyncpa [#allocation15 + $0x1], 0  ;;  %s1900_s17 = smov 0   ;;  %s1902_s18 = smov 0  }
  0x10   :  { %s1904_s19 = smov 0   ;;  %s1906_s20 = smov 0  }
  0x11 LB: > { %2292 = sst [smem:[#allocation23_spill]] %s1820_s19  ;;  %s1921_s21 = sadd.s32 4294967295, %s1824_s20   ;;  %s1824_s20 = sphi %s1906_s20, %s2318_s20   ;;  %s1820_s19 = sphi %s1904_s19, %s2320_s19   ;;  %s1816_s18 = sphi %s1902_s18, %s2322_s18   ;;  %s1812_s17 = sphi %s1900_s17, %s2321_s17  }
  0x12   : > { %s1224_s22 = sadd.s32 4294967294, %s1824_s20   ;;  %p56_p0 = scmp.ne.s32.totalorder %s1816_s18, %s1812_s17 }
  0x13   : > { %p2277_p1 = scmp.eq.s32.totalorder %s1921_s21, 0  ;;  %p274_p2 = scmp.eq.s32.totalorder %s1921_s21, 1 }
  0x14   : > { %p280_p3 = scmp.eq.s32.totalorder %s1224_s22, 1  ;;  %p1225_p5 = scmp.ge.s32.totalorder %s1824_s20, 1 }
  0x15   : > { %p1930_p4 = por %p2277_p1, %p56_p0  ;;  %p313_p7 = scmp.lt.s32.totalorder %s1824_s20, 3 }
  0x16   : > { %p1935_p6 = por %p280_p3, %p56_p0  ;;  %s1826_s26 = smov [#allocation5]  }
  0x17   : > { %s2293_s23 = scalar_select %p1930_p4, 1, 0 }
  0x18   : > { %s2294_s24 = scalar_select %p1935_p6, 1, 0 }
  0x19   : > { %p1940_p8 = pnand %p1225_p5, %p313_p7  ;;  %s325_s27 = sshll.u32 %s1826_s26, 4  ;;  %s326_s27 = int_to_ptr.vmem [resolvable:$true] %s325_s27 }
  0x1a   : > { %s1827_s29 = smov [#allocation10]   ;;  %s1828_s12 = smov [#allocation7]  }
  0x1b   : > { %p1433_p9 = pneg %p1940_p8  ;;  %s357_s30 = sshll.u32 %s1827_s29, 4  ;;  %s358_s30 = int_to_ptr.vmem [resolvable:$true] %s357_s30 }
  0x1c   : > { %s341_s13 = sshll.u32 %s1828_s12, 4  ;;  %s1565_s14 = scalar_lea.vmem %s326_s27, 1024  ;;  %s342_s13 = int_to_ptr.vmem [resolvable:$true] %s341_s13 }
  0x1d   : > { %p1949_p11 = pnand %p1433_p9, %p2277_p1  ;;  %p1566_p13 = scmp.ne.s32.totalorder %s326_s27, %s1565_s14 }
  0x1e   : > { %p1573_p5 = scmp.lt.s32.totalorder %s326_s27, %s326_s27  ;;  %p1574_p7 = scmp.lt.s32.totalorder %s1565_s14, %s1565_s14 }
  0x1f   : > { %p1556_p12 = pneg %p1949_p11 }
  0x20   : > { %p1575_p9 = por %p1574_p7, %p1573_p5 }
  0x21   : > { %p1568_p0 = pnand %p1566_p13, %p1556_p12 }
  0x23   : > { %p1569_p3 = pneg %p1568_p0 }
  0x25   : > { %p1576_p10 = pnand %p1575_p9, %p1569_p3 }
  0x27   : > { %1579 = shalt.err (!%p1576_p10)
}
  0x28   : > { %s2278_s15 = smov 64   ;;  %s2280_s16 = smov 4  }
  0x29   : > { %s2297_s1 = sld [smem:[#allocation27_spill]]  ;;  %s1591_s29 = scalar_lea.vmem %s358_s30, 512 }
  0x2a   : > { %p1592_p13 = scmp.ne.s32.totalorder %s358_s30, %s1591_s29  ;;  %p1599_p3 = scmp.lt.s32.totalorder %s358_s30, %s358_s30 }
  0x2b   : > { %p1600_p10 = scmp.lt.s32.totalorder %s1591_s29, %s1591_s29 }
  0x2c   : > { %p1594_p0 = pnand %p1592_p13, %p1556_p12 }
  0x2d   : > { %p1601_p7 = por %p1600_p10, %p1599_p3 }
  0x2e   : > { %p1595_p5 = pneg %p1594_p0 }
  0x2f   : > { %1436 = dma.hbm_to_vmem [thread:$0]  (!%p1949_p11), %s2297_s1, 1024, %s326_s27, [#allocation6], %s2278_s15, %s2278_s15, %s2280_s16  }
  0x30   : > { %p1602_p9 = pnand %p1601_p7, %p1595_p5 }
  0x32   : > { %1605 = shalt.err (!%p1602_p9)
}
  0x33   : > { %s2298_s6 = sld [smem:[#allocation29_spill]]  ;;  %s1617_s27 = scalar_lea.vmem %s342_s13, 1024 }
  0x34   : > { %p1618_p1 = scmp.ne.s32.totalorder %s342_s13, %s1617_s27  ;;  %p1625_p3 = scmp.lt.s32.totalorder %s342_s13, %s342_s13 }
  0x35   : > { %p1626_p5 = scmp.lt.s32.totalorder %s1617_s27, %s1617_s27 }
  0x36   : > { %p1620_p13 = pnand %p1618_p1, %p1556_p12 }
  0x37   : > { %p1627_p10 = por %p1626_p5, %p1625_p3 }
  0x38   : > { %p1621_p0 = pneg %p1620_p13 }
  0x39   : > { %1442 = dma.hbm_to_vmem [thread:$0]  (!%p1949_p11), %s2298_s6, 512, %s358_s30, [#allocation9], %s2278_s15, %s2278_s15, %s2280_s16  }
  0x3a   : > { %p1628_p7 = pnand %p1627_p10, %p1621_p0 }
  0x3c   : > { %1631 = shalt.err (!%p1628_p7)
}
  0x3d   : > { %s2299_s3 = sld [smem:[#allocation28_spill]]  ;;  %s1831_s30 = smov [#allocation11]  }
  0x3e   : > { %s373_s29 = sshll.u32 %s1831_s30, 4  ;;  %s374_s29 = int_to_ptr.vmem [resolvable:$true] %s373_s29 }
  0x3f   : > { %s1643_s12 = scalar_lea.vmem %s374_s29, 1024  ;;  %p1651_p0 = scmp.lt.s32.totalorder %s374_s29, %s374_s29 }
  0x40   : > { %p1644_p1 = scmp.ne.s32.totalorder %s374_s29, %s1643_s12  ;;  %p1652_p3 = scmp.lt.s32.totalorder %s1643_s12, %s1643_s12 }
  0x42   : > { %p1646_p9 = pnand %p1644_p1, %p1556_p12  ;;  %p1653_p5 = por %p1652_p3, %p1651_p0 }
  0x43   : > { %1439 = dma.hbm_to_vmem [thread:$0]  (!%p1949_p11), %s2299_s3, 1024, %s342_s13, [#allocation6], %s2278_s15, %s2278_s15, %s2280_s16  }
  0x44   : > { %p1647_p13 = pneg %p1646_p9 }
  0x46   : > { %p1654_p10 = pnand %p1653_p5, %p1647_p13 }
  0x48   : > { %1657 = shalt.err (!%p1654_p10)
}
  0x49   : > { %s2300_s8 = sld [smem:[#allocation30_spill]]  ;;  %s2000_s27 = sadd.s32 1, %s1824_s20  }
  0x4a   : > { %2301 = sst [smem:[#allocation24_spill]] %s2000_s27  ;;  %s43_s28 = sadd.s32 1, %s1820_s19 }
  0x4b   : > { %s40_s22 = ssub.s32 %s1824_s20, %s2000_s27  ;;  %p50_p12 = scmp.ne.s32.totalorder %s1820_s19, %s1816_s18 }
  0x4c   : > { %p41_p7 = scmp.eq.s32.totalorder %s40_s22, 0  ;;  %p51_p1 = scmp.eq.s32.totalorder %s1824_s20, 0 }
  0x4d   : > { %p2010_p9 = por %p274_p2, %p50_p12  ;;  %p1464_p13 = scmp.lt.s32.totalorder %s1824_s20, 2 }
  0x4e   : > { %s2016_s30 = scalar_select %p41_p7, %s1820_s19, %s43_s28  }
  0x4f   : > { %1445 = dma.hbm_to_vmem [thread:$0]  (!%p1949_p11), %s2300_s8, 1024, %s374_s29, [#allocation12], %s2278_s15, %s2278_s15, %s2280_s16  }
  0x50   : > { %s2302_s26 = scalar_select %p2010_p9, 1, 0 }
  0x51   : > { %2303 = sst [smem:[#allocation25_spill]] %s2016_s30  ;;  %p52_p0 = por %p51_p1, %p50_p12 }
  0x52   : > { %s390_s12 = sand.u32 1, %s1820_s19   ;;  %s1291_s29 = sshll.u32 %s1824_s20, 7 }
  0x53   : > { %s1231_s13 = sshll.u32 %s390_s12, 3  ;;  %s2304_s0 = sld [smem:[#allocation26_spill]] }
  0x54   : > { %s394_s22 = scalar_lea.vmem [#allocation2], %s1231_s13  ;;  %p2027_p2 = pnand %p1464_p13, %p52_p0 }
  0x55   : > { %s401_s1 = sshll.u32 %s394_s22, 4  ;;  %s2034_s8 = scalar_lea.hbm %s2270_s5, %s1291_s29  ;;  %s2025_s1 = int_to_ptr.vmem [resolvable:$true] %s401_s1 }
  0x56   : > { %s415_s15 = scalar_lea.vmem [#allocation8], %s1231_s13  ;;  %s2038_s30 = scalar_lea.sflag [#allocation3], %s390_s12 }
  0x57   : > { %s2036_s14 = sshll.u32 %s415_s15, 4  ;;  %p1660_p3 = pneg %p2027_p2  ;;  %s2069_s14 = int_to_ptr.vmem [resolvable:$true] %s2036_s14 }
  0x59   : > { %s2023_s16 = scalar_lea.hbm %s2304_s0, %s1291_s29  ;;  %s1663_s6 = scalar_lea.hbm %s2304_s0, 256 }
  0x5a   : > { %s1658_s19 = scalar_lea.hbm %s2023_s16, 128  ;;  %p1664_p12 = scmp.lt.s32.totalorder %s2023_s16, %s2304_s0 }
  0x5b   : > { %p1659_p11 = scmp.ne.s32.totalorder %s2023_s16, %s1658_s19  ;;  %p1665_p7 = scmp.lt.s32.totalorder %s1663_s6, %s1658_s19 }
  0x5d   : > { %p1661_p5 = pnand %p1660_p3, %p1659_p11  ;;  %p1666_p1 = por %p1665_p7, %p1664_p12 }
  0x5f   : > { %p1662_p10 = pneg %p1661_p5 }
  0x61   : > { %p1667_p13 = pnand %p1666_p1, %p1662_p10 }
  0x63   : > { %1670 = shalt.err (!%p1667_p13)
}
  0x64   : > { %s1671_s12 = scalar_lea.vmem %s2025_s1, 128  ;;  %s1832_s27 = smov [#allocation2]  }
  0x65   : > { %p1672_p0 = scmp.ne.s32.totalorder %s2025_s1, %s1671_s12  ;;  %s1676_s13 = sshll.u32 %s1832_s27, 4  ;;  %s1677_s13 = int_to_ptr.vmem [resolvable:$false] %s1676_s13 }
  0x66   : > { %s1678_s15 = scalar_lea.vmem %s1677_s13, 256  ;;  %p1679_p6 = scmp.lt.s32.totalorder %s2025_s1, %s1677_s13 }
  0x67   : > { %p1674_p11 = pnand %p1672_p0, %p1660_p3  ;;  %p1680_p9 = scmp.lt.s32.totalorder %s1678_s15, %s1671_s12 }
  0x69   : > { %p1675_p5 = pneg %p1674_p11  ;;  %p1681_p4 = por %p1680_p9, %p1679_p6 }
  0x6b   : > { %p1682_p12 = pnand %p1681_p4, %p1675_p5 }
  0x6d   : > { %1685 = shalt.err (!%p1682_p12)
}
  0x6e   : > { %s2306_s19 = smov 4   ;;  %s2307_s22 = smov 64  }
  0x6f   : > { %1449 = dma.hbm_to_vmem [thread:$0]  (!%p2027_p2), %s2023_s16, 128, %s2025_s1, %s2038_s30, %s2307_s22, %s2307_s22, %s2306_s19  }
  0x70   : > { %s411_s6 = sand.u32 1, %s1824_s20   ;;  %s1686_s29 = scalar_lea.hbm %s2034_s8, 128 }
  0x71   : > { %s412_s28 = scalar_lea.sflag [#allocation9], %s411_s6  ;;  %p1687_p4 = scmp.ne.s32.totalorder %s2034_s8, %s1686_s29 }
  0x72   : > { %s1691_s13 = scalar_lea.hbm %s2270_s5, 256  ;;  %p1692_p10 = scmp.lt.s32.totalorder %s2034_s8, %s2270_s5 }
  0x73   : > { %p1689_p6 = pnand %p1687_p4, %p1660_p3  ;;  %p1693_p7 = scmp.lt.s32.totalorder %s1691_s13, %s1686_s29 }
  0x75   : > { %p1690_p9 = pneg %p1689_p6  ;;  %p1694_p1 = por %p1693_p7, %p1692_p10 }
  0x77   : > { %p1695_p13 = pnand %p1694_p1, %p1690_p9 }
  0x79   : > { %1698 = shalt.err (!%p1695_p13)
}
  0x7a   : > { %s1699_s1 = scalar_lea.vmem %s2069_s14, 128  ;;  %s1833_s16 = smov [#allocation8]  }
  0x7b   : > { %p1700_p0 = scmp.ne.s32.totalorder %s2069_s14, %s1699_s1  ;;  %s1704_s30 = sshll.u32 %s1833_s16, 4  ;;  %s1705_s30 = int_to_ptr.vmem [resolvable:$false] %s1704_s30 }
  0x7c   : > { %s1706_s6 = scalar_lea.vmem %s1705_s30, 256  ;;  %p1707_p12 = scmp.lt.s32.totalorder %s2069_s14, %s1705_s30 }
  0x7d   : > { %p1702_p11 = pnand %p1700_p0, %p1660_p3  ;;  %p1708_p4 = scmp.lt.s32.totalorder %s1706_s6, %s1699_s1 }
  0x7f   : > { %p1703_p5 = pneg %p1702_p11  ;;  %p1709_p6 = por %p1708_p4, %p1707_p12 }
  0x81   : > { %p1710_p10 = pnand %p1709_p6, %p1703_p5 }
  0x83   : > { %1713 = shalt.err (!%p1710_p10)
}
  0x84   : > { %1452 = dma.hbm_to_vmem [thread:$0]  (!%p2027_p2), %s2034_s8, 128, %s2069_s14, %s412_s28, %s2307_s22, %s2307_s22, %s2306_s19  }
  0x85   : > { %434 = sbr.rel (%p1940_p8) target bundleno = 1154 (0x482), region = 60  ;;  %s2100_s0 = sand.u32 (!%p1940_p8), 1, %s1816_s18  }
  0x86   : > { %s2103_s29 = sshll.u32 (!%p1940_p8), %s2100_s0, 3  ;;  %s437_s12 = scalar_lea.sflag (!%p1940_p8), [#allocation3], %s2100_s0 }
  0x87   : > { %s440_s3 = scalar_lea.vmem (!%p1940_p8), [#allocation2], %s2103_s29  ;;  %p2308_p3 = scmp.ne.s32.totalorder (!%p1940_p8), %s2293_s23, 0 }
  0x8a   : > { %1783 = dma.done.wait (%p2308_p3), %s437_s12, 128  }
  0x8b   : > { %1785 = vsyncadd (%p2308_p3), %s437_s12, 4294967168  ;;  %p2309_p2 = scmp.eq.s32.totalorder %s1921_s21, 0 }
  0x8d   : > { %1787 = dma.done.wait (%p2309_p2), [#allocation6], 2048   ;;  %p2310_p8 = pmov %p2309_p2 }
  0x8e   : > { %s453_s8 = sand.u32 1, %s1921_s21   ;;  %s457_s14 = scalar_lea.vmem [#allocation8], %s2103_s29 }
  0x8f   : > { %1789 = vsyncadd (%p2310_p8), [#allocation6], 4294965248  ;;  %s454_s25 = scalar_lea.sflag [#allocation9], %s453_s8 }
  0x90   : > { %1791 = dma.done.wait (%p2308_p3), %s454_s25, 128  }
  0x91   : > { %1793 = vsyncadd (%p2308_p3), %s454_s25, 4294967168  ;;  %p2311_p9 = pmov %p2309_p2 }
  0x92   : > { %p2312_p7 = pmov %p2309_p2 }
  0x93   : > { %1795 = dma.done.wait (%p2311_p9), [#allocation9], 512  }
  0x94   : > { %1797 = vsyncadd (%p2312_p7), [#allocation9], 4294966784  ;;  %p2313_p1 = pmov %p2309_p2 }
  0x96   : > { %1799 = dma.done.wait (%p2313_p1), [#allocation12], 1024   ;;  %p2314_p13 = pmov %p2313_p1 }
  0x97   : > { %v1834_v0 = vmov 0.0   ;;  %vm1835_vm0 = vmmov 0   ;;  %v1517_v1 = vld [vmem:[#allocation5 + $0x38] sm:$0xff]   ;;  %v1518_v2 = vld [vmem:[#allocation5 + $0x30] sm:$0xff]   ;;  %v1519_v3 = vld [vmem:[#allocation5 + $0x28] sm:$0xff]   ;;  %s1836_s23 = smov 64  }
  0x98   : > { %1801 = vsyncadd (%p2314_p13), [#allocation12], 4294966272  ;;  %1337 = vmatprep.subr.bf16.mxu0 %v1834_v0  ;;  %1353 = vmatprep.mubr.msk.bf16.mxu0 %vm1835_vm0, %v1834_v0  ;;  %v1526_v4 = vld [vmem:[#allocation7 + $0x38] sm:$0xff]   ;;  %v1520_v5 = vld [vmem:[#allocation5 + $0x20] sm:$0xff]   ;;  %vm812_vm1 = vcmask 523264   ;;  %s513_s13 = scalar_lea.vmem [#allocation14], %s2103_s29 }
  0x99   : > { %1357 = vmatprep.subr.bf16.mxu1 %v1834_v0  ;;  %1373 = vmatprep.mubr.msk.bf16.mxu1 %vm1835_vm0, %v1834_v0  ;;  %v1527_v6 = vld [vmem:[#allocation7 + $0x30] sm:$0xff]   ;;  %v1521_v7 = vld [vmem:[#allocation5 + $0x18] sm:$0xff]   ;;  %v1523_v9 = vld [vmem:[#allocation5 + $0x8] sm:$0xff]   ;;  %s1295_s16 = sshll.u32 %s1921_s21, 7  ;;  %s1032_s8 = scalar_lea.sflag [#allocation15], %s2100_s0 }
  0x9a   : > { %1338 = vmatpush3.bf16.msra.mxu0 %v1517_v1  ;;  %1358 = vmatpush3.bf16.msra.mxu1 %v1526_v4  ;;  %v1522_v8 = vld [vmem:[#allocation5 + $0x10] sm:$0xff]   ;;  %v1524_v10 = vld [vmem:[#allocation5] sm:$0xff]   ;;  %v1528_v12 = vld [vmem:[#allocation7 + $0x28] sm:$0xff]   ;;  %s1059_s12 = scalar_lea.hbm %s2276_s11, %s1295_s16  ;;  %p2315_p11 = scmp.ne.s32.totalorder %s2302_s26, 0 }
  0x9b   : > { %1339 = vmatprep.subr.bf16.mxu0 %v1834_v0  ;;  %1359 = vmatprep.subr.bf16.mxu1 %v1834_v0  ;;  %v1525_v11 = vld [vmem:[%s440_s3] sm:$0xff]   ;;  %v1529_v13 = vld [vmem:[#allocation7 + $0x20] sm:$0xff]   ;;  %v1532_v16 = vld [vmem:[#allocation7 + $0x8] sm:$0xff]   ;;  %s1061_s3 = sshll.u32 %s513_s13, 4  ;;  %s1062_s3 = int_to_ptr.vmem [resolvable:$true] %s1061_s3 }
  0x9c   : > { %v1530_v14 = vld [vmem:[#allocation7 + $0x18] sm:$0xff]   ;;  %v1531_v15 = vld [vmem:[#allocation7 + $0x10] sm:$0xff]   ;;  %v1533_v17 = vld [vmem:[#allocation7] sm:$0xff]   ;;  %s1714_s25 = scalar_lea.vmem %s1062_s3, 128 }
  0x9d   : > { %v1297_v18 = vld [vmem:[%s457_s14] sm:$0xff]   ;;  %v1246_v22 = vld [vmem:[%s2267_s2] ss:$0 sm:$0xff]  ;;  %v1536_v43 = vld [vmem:[#allocation10 + $0x8] sm:$0xff]   ;;  %p1715_p0 = scmp.ne.s32.totalorder %s1062_s3, %s1714_s25  ;;  %s1837_s14 = smov [#allocation14]  }
  0x9e   : > { %1340 = vmatpush3.bf16.msra.mxu0 %v1518_v2  ;;  %1360 = vmatpush3.bf16.msra.mxu1 %v1527_v6  ;;  %v1298_v19 = vunpack.c.l.bf16 %v1297_v18  ;;  %v1299_v20 = vunpack.c.h.bf16 %v1297_v18  ;;  %v1534_v32 = vld [vmem:[#allocation10 + $0x18] sm:$0xff]   ;;  %v1535_v33 = vld [vmem:[#allocation10 + $0x10] sm:$0xff]   ;;  %v1256_v34 = vld [vmem:[%s2269_s4] ss:$0 sm:$0xff]  ;;  %s1718_s19 = sshll.u32 %s1837_s14, 4  ;;  %s1719_s19 = int_to_ptr.vmem [resolvable:$false] %s1718_s19 }
  0x9f   : > { %1341 = vmatprep.subr.bf16.mxu0 %v1834_v0  ;;  %1361 = vmatprep.subr.bf16.mxu1 %v1834_v0  ;;  %v1537_v44 = vld [vmem:[#allocation10] sm:$0xff]   ;;  %v1538_v58 = vld [vmem:[#allocation11 + $0x38] sm:$0xff]   ;;  %v1539_v62 = vld [vmem:[#allocation11 + $0x30] sm:$0xff]   ;;  %p1716_p5 = pnand %p1715_p0, %p2315_p11  ;;  %s1720_s22 = scalar_lea.vmem %s1719_s19, 256 }
  0xa0   : > { %v1512_v21 = vpack.i.bf16 %v1299_v20, %v1298_v19  ;;  %v1540_v6 = vld [vmem:[#allocation11 + $0x28] sm:$0xff]   ;;  %p1721_p4 = scmp.lt.s32.totalorder %s1062_s3, %s1719_s19  ;;  %p1722_p6 = scmp.lt.s32.totalorder %s1720_s22, %s1714_s25 }
  0xa1   : > { %p1717_p12 = pneg %p1716_p5 }
  0xa2   : > { %1342 = vmatpush3.bf16.msra.mxu0 %v1519_v3  ;;  %1362 = vmatpush3.bf16.msra.mxu1 %v1528_v12  ;;  %v1544_v12 = vld [vmem:[#allocation11 + $0x8] sm:$0xff]   ;;  %p1723_p10 = por %p1722_p6, %p1721_p4 }
  0xa3   : > { %1343 = vmatprep.subr.bf16.mxu0 %v1834_v0  ;;  %1363 = vmatprep.subr.bf16.mxu1 %v1834_v0 }
  0xa4   : > { %1513 = vrot.lane.b32.xlu0 %v1512_v21, %s1836_s23  ;;  %p1724_p3 = pnand %p1723_p10, %p1717_p12 }
  0xa6   : > { %1344 = vmatpush3.bf16.msra.mxu0 %v1520_v5  ;;  %1364 = vmatpush3.bf16.msra.mxu1 %v1529_v13  ;;  %v1545_v13 = vld [vmem:[#allocation11] sm:$0xff]  }
  0xa7   : > { %1345 = vmatprep.subr.bf16.mxu0 %v1834_v0  ;;  %1365 = vmatprep.subr.bf16.mxu1 %v1834_v0 }
  0xaa   : > { %1346 = vmatpush3.bf16.msra.mxu0 %v1521_v7  ;;  %1366 = vmatpush3.bf16.msra.mxu1 %v1530_v14  ;;  %v781_v14 = vlaneseq }
  0xab   : > { %1347 = vmatprep.subr.bf16.mxu0 %v1834_v0  ;;  %1367 = vmatprep.subr.bf16.mxu1 %v1834_v0 }
  0xae   : > { %1348 = vmatpush3.bf16.msra.mxu0 %v1522_v8  ;;  %1368 = vmatpush3.bf16.msra.mxu1 %v1531_v15  ;;  %v782_v15 = vand.u32 127, %v781_v14 }
  0xaf   : > { %1349 = vmatprep.subr.bf16.mxu0 %v1834_v0  ;;  %1369 = vmatprep.subr.bf16.mxu1 %v1834_v0 }
  0xb0   : > { %vm783_vm2 = vcmp.lt.s32.totalorder %v782_v15, 16 }
  0xb2   : > { %1350 = vmatpush3.bf16.msra.mxu0 %v1523_v9  ;;  %1370 = vmatpush3.bf16.msra.mxu1 %v1532_v16  ;;  %v1541_v9 = vld [vmem:[#allocation11 + $0x20] sm:$0xff]  }
  0xb3   : > { %1351 = vmatprep.subr.bf16.mxu0 %v1834_v0  ;;  %1371 = vmatprep.subr.bf16.mxu1 %v1834_v0 }
  0xb6   : > { %1352 = vmatpush3.bf16.msra.mxu0 %v1524_v10  ;;  %1372 = vmatpush3.bf16.msra.mxu1 %v1533_v17  ;;  %v1542_v10 = vld [vmem:[#allocation11 + $0x18] sm:$0xff]  }
  0xb7   : > { %1377 = vmatprep.subr.bf16.mxu0 %v1834_v0  ;;  %1389 = vmatprep.subr.bf16.mxu1 %v1834_v0 }
  0xb9   : > { %1354 = vmatmul.mubr.bf16.vlgmr.msra.gmra.mxu0 %v1525_v11  ;;  %v1543_v11 = vld [vmem:[#allocation11 + $0x10] sm:$0xff]  }
  0xba   : > { %1385 = vmatprep.mubr.msk.bf16.mxu0 %vm1835_vm0, %v1834_v0  ;;  %1378 = vmatpush3.bf16.msra.mxu0 %v1534_v32 }
  0xbb   : > { %1379 = vmatprep.subr.bf16.mxu0 %v1834_v0 }
  0xbe   : > { %1380 = vmatpush3.bf16.msra.mxu0 %v1535_v33 }
  0xbf   : > { %1381 = vmatprep.subr.bf16.mxu0 %v1834_v0 }
  0xc2   : > { %1382 = vmatpush3.bf16.msra.mxu0 %v1536_v43 }
  0xc3   : > { %1383 = vmatprep.subr.bf16.mxu0 %v1834_v0 }
  0xc6   : > { %1384 = vmatpush3.bf16.msra.mxu0 %v1537_v44 }
 0x116   : > { %v1514_v45 = vpop.permute.xlu0 %1513 }
 0x117   : > { %v1515_v46 = vunpack.i.l.bf16 %v1514_v45  ;;  %v1516_v48 = vunpack.i.h.bf16 %v1514_v45 }
 0x179   : > { %v631_v23 = vpop.f32.mrf.mxu0 }
 0x17a   : > { %v632_v24 = vadd.f32 %v1246_v22, %v631_v23 }
 0x17b   : > { %v1355_v25 = vpop.f32.mrf.mxu0 }
 0x17c   : > { %1546 = vtanh.f32 %v632_v24 }
 0x17d   : > { %v634_v26 = vpop.f32.mrf.mxu0 }
 0x17e   : > { %v635_v27 = vadd.f32 %v1246_v22, %v634_v26 }
 0x17f   : > { %v1356_v28 = vpop.f32.mrf.mxu0 }
 0x180   : > { %1548 = vtanh.f32 %v635_v27 }
 0x189   : > { %v1547_v29 = vpop.eup %1546 }
 0x18d   : > { %v1549_v30 = vpop.eup %1548 }
 0x18e   : > { %v640_v31 = vpack.c.bf16 %v1549_v30, %v1547_v29 }
 0x190   : > { %1374 = vmatmul.mubr.bf16.vlgmr.msra.gmra.mxu1 %v640_v31 }
 0x191   : > { %1405 = vmatprep.mubr.msk.bf16.mxu1 %vm1835_vm0, %v1834_v0  ;;  %1390 = vmatpush3.bf16.msra.mxu1 %v1538_v58 }
 0x192   : > { %1391 = vmatprep.subr.bf16.mxu1 %v1834_v0 }
 0x195   : > { %1392 = vmatpush3.bf16.msra.mxu1 %v1539_v62 }
 0x196   : > { %1393 = vmatprep.subr.bf16.mxu1 %v1834_v0 }
 0x199   : > { %1394 = vmatpush3.bf16.msra.mxu1 %v1540_v6 }
 0x19a   : > { %1395 = vmatprep.subr.bf16.mxu1 %v1834_v0 }
 0x19d   : > { %1396 = vmatpush3.bf16.msra.mxu1 %v1541_v9 }
 0x19e   : > { %1397 = vmatprep.subr.bf16.mxu1 %v1834_v0 }
 0x1a1   : > { %1398 = vmatpush3.bf16.msra.mxu1 %v1542_v10 }
 0x1a2   : > { %1399 = vmatprep.subr.bf16.mxu1 %v1834_v0 }
 0x1a5   : > { %1400 = vmatpush3.bf16.msra.mxu1 %v1543_v11 }
 0x1a6   : > { %1401 = vmatprep.subr.bf16.mxu1 %v1834_v0 }
 0x1a9   : > { %1402 = vmatpush3.bf16.msra.mxu1 %v1544_v12 }
 0x1aa   : > { %1403 = vmatprep.subr.bf16.mxu1 %v1834_v0  ;;  %v1267_v0 = vld [vmem:[%s2272_s7] ss:$0 sm:$0xff] }
 0x1ad   : > { %1404 = vmatpush3.bf16.msra.mxu1 %v1545_v13 }
 0x250   : > { %v746_v35 = vpop.f32.mrf.mxu1 }
 0x251   : > { %v747_v36 = vadd.f32 %v1256_v34, %v746_v35 }
 0x252   : > { %v1375_v37 = vpop.f32.mrf.mxu1 }
 0x253   : > { %v753_v38 = vmul.f32 1.442695, %v747_v36  ;;  %v786_v53 = vmul.f32 %v747_v36, %v747_v36 }
 0x254   : > { %v749_v39 = vpop.f32.mrf.mxu1 }
 0x255   : > { %1550 = vpow2.f32 %v753_v38  ;;  %v750_v40 = vadd.f32 %v1256_v34, %v749_v39 }
 0x256   : > { %v1376_v41 = vpop.f32.mrf.mxu1 }
 0x257   : > { %v755_v42 = vmul.f32 1.442695, %v750_v40  ;;  %v787_v51 = vmul.f32 %v750_v40, %v750_v40 }
 0x259   : > { %1552 = vpow2.f32 %v755_v42 }
 0x262   : > { %v1551_v47 = vpop.eup %1550 }
 0x263   : > { %v769_v49 = vmul.f32 %v1551_v47, %v1515_v46  ;;  %v784_v2 = vmul.f32 %v1551_v47, %v1551_v47 }
 0x265   : > { %773 = vrot.lane.b32.xlu0 %v769_v49, %s1836_s23 }
 0x266   : > { %v1553_v50 = vpop.eup %1552 }
 0x267   : > { %v770_v52 = vmul.f32 %v1553_v50, %v1516_v48  ;;  %v785_v55 = vmul.f32 %v1553_v50, %v1553_v50 }
 0x269   : > { %792 = vrot.lane.b32.xlu0 %v787_v51, %s1836_s23  ;;  %775 = vrot.lane.b32.xlu1 %v770_v52, %s1836_s23 }
 0x26d   : > { %790 = vrot.lane.b32.xlu1 %v786_v53, %s1836_s23 }
 0x2d7   : > { %v774_v54 = vpop.permute.xlu0 %773 }
 0x2d8   : > { %v779_v59 = vadd.f32 %v774_v54, %v747_v36 }
 0x2db   : > { %v793_v56 = vpop.permute.xlu0 %792  ;;  %v776_v57 = vpop.permute.xlu1 %775 }
 0x2dc   : > { %v797_v60 = vadd.f32 %v793_v56, %v785_v55  ;;  %v780_v61 = vadd.f32 %v776_v57, %v750_v40 }
 0x2de   : > { %v799_v63 = vsub.f32 %v797_v60, %v750_v40  ;;  %v817_v1 = vpack.c.bf16 %v780_v61, %v779_v59 }
 0x2df   : > { %v791_v3 = vpop.permute.xlu1 %790 }
 0x2e0   : > { %v1266_v4 = vadd.f32 -0.5, %v799_v63  ;;  %v796_v5 = vadd.f32 %v791_v3, %v784_v2  ;;  %1386 = vmatmul.mubr.msk.bf16.vlgmr.msra.gmra.mxu0 %vm812_vm1, %v817_v1 }
 0x2e2   : > { %v798_v7 = vsub.f32 %v796_v5, %v747_v36  ;;  %806 = vrot.lane.b32.xlu0 %v1266_v4, %s1836_s23 }
 0x2e4   : > { %v1265_v8 = vadd.f32 -0.5, %v798_v7 }
 0x2e6   : > { %804 = vrot.lane.b32.xlu1 %v1265_v8, %s1836_s23 }
 0x354   : > { %v807_v16 = vpop.permute.xlu0 %806 }
 0x355   : > { %v811_v17 = vsel %vm783_vm2, %v807_v16, 0.0 }
 0x356   : > { %v814_v20 = vsel %vm812_vm1, %v811_v17, 0.0 }
 0x358   : > { %v805_v18 = vpop.permute.xlu1 %804 }
 0x359   : > { %v810_v19 = vsel %vm783_vm2, %v805_v18, 0.0 }
 0x35a   : > { %v813_v21 = vsel %vm812_vm1, %v810_v19, 0.0 }
 0x35b   : > { %v815_v22 = vadd.f32 %v814_v20, %v813_v21 }
 0x35d   : > { %816 = vst.msk [vmem:[%s513_s13] sm:$0xff] %vm812_vm1, %v815_v22 }
 0x3a0   : > { %v894_v23 = vpop.f32.mrf.mxu0 }
 0x3a1   : > { %v895_v25 = vadd.f32 %v1267_v0, %v894_v23 }
 0x3a2   : > { %v1387_v24 = vpop.f32.mrf.mxu0 }
 0x3a3   : > { %v901_v29 = vmax.f32 %v895_v25, 0.0 }
 0x3a4   : > { %v897_v26 = vpop.f32.mrf.mxu0 }
 0x3a5   : > { %v898_v27 = vadd.f32 %v1267_v0, %v897_v26 }
 0x3a6   : > { %v1388_v28 = vpop.f32.mrf.mxu0 }
 0x3a7   : > { %v902_v30 = vmax.f32 %v898_v27, 0.0 }
 0x3a9   : > { %v903_v31 = vpack.c.bf16 %v902_v30, %v901_v29 }
 0x3ab   : > { %1406 = vmatmul.mubr.bf16.vlgmr.msra.gmra.mxu1 %v903_v31 }
 0x3ac   : > { %1727 = shalt.err (!%p1724_p3)
}
 0x3ad   : > { %s1728_s28 = scalar_lea.hbm %s1059_s12, 128  ;;  %s1732_s15 = scalar_lea.hbm %s2276_s11, 256 }
 0x3ae   : > { %p1729_p2 = scmp.ne.s32.totalorder %s1059_s12, %s1728_s28  ;;  %p1733_p7 = scmp.lt.s32.totalorder %s1059_s12, %s2276_s11 }
 0x3af   : > { %p1734_p1 = scmp.lt.s32.totalorder %s1732_s15, %s1728_s28 }
 0x3b0   : > { %p1730_p8 = pnand %p1729_p2, %p2315_p11 }
 0x3b1   : > { %p1735_p13 = por %p1734_p1, %p1733_p7 }
 0x3b2   : > { %p1731_p9 = pneg %p1730_p8 }
 0x3b4   : > { %p1736_p0 = pnand %p1735_p13, %p1731_p9 }
 0x3b6   : > { %1739 = shalt.err (!%p1736_p0)
}
 0x3b7   : > { %1430 = dma.vmem_to_hbm [thread:$0]  (%p2315_p11), %s1062_s3, 128, %s1059_s12, %s1032_s8   ;;  %v1273_v33 = vld [vmem:[%s2274_s9] ss:$0 sm:$0xff] }
 0x3b8   : > { %s506_s14 = scalar_lea.vmem [#allocation13], %s2103_s29  ;;  %s2220_s8 = scalar_lea.hbm %s2275_s10, %s1295_s16 }
 0x3b9   : > { %s1045_s19 = sshll.u32 %s506_s14, 4  ;;  %s1027_s22 = scalar_lea.sflag [#allocation4], %s2100_s0  ;;  %s2213_s19 = int_to_ptr.vmem [resolvable:$true] %s1045_s19 }
 0x3ba   : > { %s1740_s29 = scalar_lea.vmem %s2213_s19, 128  ;;  %s1838_s28 = smov [#allocation13]  }
 0x3bb   : > { %p1741_p5 = scmp.ne.s32.totalorder %s2213_s19, %s1740_s29  ;;  %s1744_s27 = sshll.u32 %s1838_s28, 4  ;;  %s1745_s27 = int_to_ptr.vmem [resolvable:$false] %s1744_s27 }
 0x3bc   : > { %s1746_s13 = scalar_lea.vmem %s1745_s27, 256  ;;  %p1747_p6 = scmp.lt.s32.totalorder %s2213_s19, %s1745_s27 }
 0x3bd   : > { %p1742_p12 = pnand %p1741_p5, %p2315_p11  ;;  %p1748_p10 = scmp.lt.s32.totalorder %s1746_s13, %s1740_s29 }
 0x3bf   : > { %p1743_p4 = pneg %p1742_p12  ;;  %p1749_p3 = por %p1748_p10, %p1747_p6 }
 0x3c1   : > { %p1750_p2 = pnand %p1749_p3, %p1743_p4 }
 0x46b   : > { %v1009_v32 = vpop.f32.mrf.mxu1 }
 0x46c   : > { %v1010_v36 = vadd.f32 %v1273_v33, %v1009_v32 }
 0x46d   : > { %v1407_v34 = vpop.f32.mrf.mxu1 }
 0x46f   : > { %v1012_v35 = vpop.f32.mrf.mxu1 }
 0x470   : > { %v1013_v37 = vadd.f32 %v1273_v33, %v1012_v35 }
 0x471   : > { %v1408_v38 = vpop.f32.mrf.mxu1 }
 0x472   : > { %v1303_v39 = vpack.c.bf16 %v1013_v37, %v1010_v36 }
 0x474   : > { %1304 = vst [vmem:[%s506_s14] sm:$0xff] %v1303_v39  }
 0x475   : > { %1753 = shalt.err (!%p1750_p2)
}
 0x476   : > { %s1754_s21 = scalar_lea.hbm %s2220_s8, 128  ;;  %s1758_s1 = scalar_lea.hbm %s2275_s10, 256 }
 0x477   : > { %p1755_p8 = scmp.ne.s32.totalorder %s2220_s8, %s1754_s21  ;;  %p1759_p1 = scmp.lt.s32.totalorder %s2220_s8, %s2275_s10 }
 0x478   : > { %p1760_p13 = scmp.lt.s32.totalorder %s1758_s1, %s1754_s21 }
 0x479   : > { %p1756_p9 = pnand %p1755_p8, %p2315_p11 }
 0x47a   : > { %p1761_p0 = por %p1760_p13, %p1759_p1 }
 0x47b   : > { %p1757_p7 = pneg %p1756_p9 }
 0x47d   : > { %p1762_p5 = pnand %p1761_p0, %p1757_p7 }
 0x47f   : > { %1765 = shalt.err (!%p1762_p5)
}
 0x480   : > { %s1839_s25 = smov 4  }
 0x481   : > { %1429 = dma.vmem_to_hbm [thread:$0]  (%p2315_p11), %s2213_s19, 128, %s2220_s8, %s1027_s22, %s1836_s23, %s1836_s23, %s1839_s25  }
 0x482 PF: > { %s1073_s14 = sand.u32 1, %s1812_s17   ;;  %p2316_p12 = scmp.ne.s32.totalorder %s2294_s24, 0 }
 0x483   : > { %p2317_p4 = scmp.ge.s32.totalorder %s1824_s20, 2  ;;  %s1074_s12 = scalar_lea.sflag [#allocation4], %s1073_s14 }
 0x485   : > { %p1454_p6 = pnand %p2317_p4, %p2316_p12 }
 0x487   : > { %p1455_p10 = pneg %p1454_p6 }
 0x489   : > { %1803 = dma.done.wait (%p1455_p10), %s1074_s12, 128  }
 0x48a   : > { %1805 = vsyncadd (%p1455_p10), %s1074_s12, 4294967168  ;;  %s1083_s26 = scalar_lea.sflag [#allocation15], %s1073_s14 }
 0x48b   : > { %1807 = dma.done.wait (%p1455_p10), %s1083_s26, 128  }
 0x48c   : > { %1809 = vsyncadd (%p1455_p10), %s1083_s26, 4294967168  ;;  %s2318_s20 = sld [smem:[#allocation24_spill]]  ;;  %s2321_s17 = smov %s1816_s18 }
 0x48d   : > { %s2319_s0 = sld [smem:[#allocation23_spill]] }
 0x48e   : > { %s2320_s19 = sld [smem:[#allocation25_spill]] }
 0x492   : > { %p33_p11 = scmp.ge.s32.totalorder %s2318_s20, 4  }
 0x493   : > { %s2322_s18 = smov %s2319_s0 }
 0x494   :  { %35 = sbr.rel (!%p33_p11) target bundleno = 17 (0x11), region = 151 }
 0x499   :  { %1088 = vsyncpa [#allocation3], 1 }
 0x49a   :  { %1090 = vsyncpa [#allocation3 + $0x1], 1 }
 0x49b   :  { %1091 = vsyncpa [#allocation6], 1 }
 0x49c   :  { %1092 = vsyncpa [#allocation9], 1 }
 0x49d   :  { %1094 = vsyncpa [#allocation9 + $0x1], 1 }
 0x49e   :  { %1095 = vsyncpa [#allocation12], 1 }
 0x49f   :  { %1096 = vsyncpa [#allocation4], 1 }
 0x4a0   :  { %1098 = vsyncpa [#allocation4 + $0x1], 1 }
 0x4a1   :  { %1099 = vsyncpa [#allocation15], 1 }
 0x4a2   :  { %1101 = vsyncpa [#allocation15 + $0x1], 1 }

</bundles_post_ra>
